<compile_context>
chip_gen: v5e
topology: v5e:2x2
jax: 0.10.0
libtpu: 0.0.40
codegen_flags: <defaults>
</compile_context>

<pallas_src>
import functools

import jax
import jax.numpy as jnp
from jax import lax
from jax.experimental import pallas as pl
from jax.experimental.pallas import tpu as pltpu


# ----------------------------------------------------------------------------
# Kernel 1: one R-tile of the implicit-GEMM conv + fused per-channel partial sums.
#   lhs_ref : (tile_r, Kfold)        f32   (Kfold = kt*kh*Wp*Cin, lane-dense)
#   w2_ref  : (Kfold, Wo*Cout)       f32   (banded expanded weight)
#   out_ref : (tile_r, Wo*Cout)            (lane-dense conv output tile)
#   stats_ref: (1, 2, Wo*Cout)       f32   (row 0 = sum, row 1 = sum of squares)
# ----------------------------------------------------------------------------
def _conv_stats_kernel(lhs_ref, w2_ref, out_ref, stats_ref):
    acc = jnp.dot(lhs_ref[...], w2_ref[...],
                  preferred_element_type=jnp.float32)      # (tile_r, Wo*Cout), f32
    out_ref[...] = acc.astype(out_ref.dtype)

    # Fused BN-statistics epilogue: per-(wo,c)-lane partial sums over this tile's
    # rows, computed from the f32 accumulator (zero-padded rows contribute 0, so
    # dividing by the true element count later stays exact).
    s = jnp.sum(acc, axis=0, keepdims=True)                # (1, Wo*Cout)
    ss = jnp.sum(acc * acc, axis=0, keepdims=True)         # (1, Wo*Cout)
    stats_ref[0] = jnp.concatenate([s, ss], axis=0)        # (2, Wo*Cout)


# ----------------------------------------------------------------------------
# Kernel 2: normalize + ReLU on the lane-dense layout.
#   y_ref     : (tile_r, Wo*Cout)
#   scale_ref : (1, Wo*Cout)   = gamma[c] * rsqrt(var[c]+eps) broadcast per lane
#   shift_ref : (1, Wo*Cout)   = beta[c]  - mean[c]*scale[c]  broadcast per lane
# ----------------------------------------------------------------------------
def _bn_relu_kernel(y_ref, scale_ref, shift_ref, o_ref):
    y = y_ref[...].astype(jnp.float32)
    out = y * scale_ref[...] + shift_ref[...]
    o_ref[...] = jnp.maximum(out, 0.0).astype(o_ref.dtype)


# ----------------------------------------------------------------------------
# Wrapper: NCDHW in / NCDHW out, like the PyTorch module.
# ----------------------------------------------------------------------------
def basic_conv3d(x_ncdhw, weight, gamma, beta, *, stride, padding, eps=1e-3,
                 tile_r=64, interm_dtype=jnp.float32):
    # interm_dtype=jnp.bfloat16 halves HBM traffic of the intermediate (stats stay
    # f32 since they come from the in-kernel f32 accumulator); default f32 for
    # bit-tight parity with the f32 reference.
    if isinstance(stride, int):
        stride = (stride,) * 3
    if isinstance(padding, int):
        padding = (padding,) * 3
    kt, kh, kw, cin, cout = weight.shape
    st, sh, sw = stride
    pt, ph, pw = padding

    # --- layout glue: NCDHW -> NDHWC, zero pad ---
    x = jnp.transpose(x_ncdhw, (0, 2, 3, 4, 1)).astype(jnp.float32)
    n, d, h, w_sz, _ = x.shape
    x_pad = jnp.pad(x, ((0, 0), (pt, pt), (ph, ph), (pw, pw), (0, 0)))
    dp, hp, wp = d + 2 * pt, h + 2 * ph, w_sz + 2 * pw
    do = (dp - kt) // st + 1
    ho = (hp - kh) // sh + 1
    wo = (wp - kw) // sw + 1
    woc = wo * cout

    # --- D/H im2col only (W and Cin stay folded, lane-dense): LHS (R, Kfold) ---
    taps = []
    for dt in range(kt):
        for dh in range(kh):
            taps.append(x_pad[:, dt:dt + (do - 1) * st + 1:st,
                              dh:dh + (ho - 1) * sh + 1:sh, :, :])
    lhs = jnp.stack(taps, axis=3)                      # (n, do, ho, kt*kh, wp, cin)
    kfold = kt * kh * wp * cin
    r = n * do * ho
    lhs = lhs.reshape(r, kfold)

    # --- banded expanded weight: (Kfold, Wo*Cout) so that lhs @ w2 == conv ---
    # w2[((dt*kh+dh)*wp + wi)*cin + ci, j*cout + c] = w[dt,dh, wi - j*sw, ci, c]
    # for 0 <= wi - j*sw < kw, else 0.
    w_k = weight.astype(jnp.float32).reshape(kt * kh, kw, cin, cout)
    w2 = jnp.zeros((kt * kh, wp, cin, wo, cout), jnp.float32)
    for j in range(wo):
        w2 = w2.at[:, j * sw:j * sw + kw, :, j, :].set(w_k)
    w2 = w2.reshape(kfold, woc)

    # --- pad R up to a tile multiple (zero rows add 0 to the BN sums) ---
    rp = ((r + tile_r - 1) // tile_r) * tile_r
    if rp != r:
        lhs = jnp.pad(lhs, ((0, rp - r), (0, 0)))
    n_tiles = rp // tile_r

    # --- Pallas kernel 1: tiled conv matmul + fused BN partial sums ---
    conv_out, stats = pl.pallas_call(
        _conv_stats_kernel,
        out_shape=(
            jax.ShapeDtypeStruct((rp, woc), interm_dtype),
            jax.ShapeDtypeStruct((n_tiles, 2, woc), jnp.float32),
        ),
        grid=(n_tiles,),
        in_specs=[
            pl.BlockSpec((tile_r, kfold), lambda i: (i, 0)),
            pl.BlockSpec((kfold, woc), lambda i: (0, 0)),
        ],
        out_specs=(
            pl.BlockSpec((tile_r, woc), lambda i: (i, 0)),
            pl.BlockSpec((1, 2, woc), lambda i: (i, 0, 0)),
        ),
        compiler_params=pltpu.CompilerParams(
            dimension_semantics=("parallel",),
            vmem_limit_bytes=32 * 1024 * 1024,
        ),
    )(lhs, w2)

    # --- finalize global batch statistics (tiny O(n_tiles*Cout) glue) ---
    m_total = n * do * ho * wo                         # elements per channel
    tot = jnp.sum(stats, axis=0)                       # (2, woc)
    tot = tot.reshape(2, wo, cout).sum(axis=1)         # (2, cout)  fold the wo lanes
    mean = tot[0] / m_total
    var = tot[1] / m_total - mean * mean               # biased var (train-mode BN)
    scale = gamma.astype(jnp.float32) * lax.rsqrt(var + eps)
    shift = beta.astype(jnp.float32) - mean * scale
    # per-lane (lane = wo*cout + c) broadcast of the per-channel affine
    scale_lane = jnp.tile(scale, wo).reshape(1, woc)
    shift_lane = jnp.tile(shift, wo).reshape(1, woc)

    # --- Pallas kernel 2: tiled, parallel normalize + ReLU ---
    out2d = pl.pallas_call(
        _bn_relu_kernel,
        out_shape=jax.ShapeDtypeStruct((rp, woc), jnp.float32),
        grid=(n_tiles,),
        in_specs=[
            pl.BlockSpec((tile_r, woc), lambda i: (i, 0)),
            pl.BlockSpec((1, woc), lambda i: (0, 0)),
            pl.BlockSpec((1, woc), lambda i: (0, 0)),
        ],
        out_specs=pl.BlockSpec((tile_r, woc), lambda i: (i, 0)),
        compiler_params=pltpu.CompilerParams(
            dimension_semantics=("parallel",),
            vmem_limit_bytes=32 * 1024 * 1024,
        ),
    )(conv_out, scale_lane, shift_lane)

    # --- layout glue back: rows (n, do, ho), lanes (wo, c) -> NCDHW ---
    out = out2d[:r].reshape(n, do, ho, wo, cout)
    return jnp.transpose(out, (0, 4, 1, 2, 3))


# ----------------------------------------------------------------------------
# Pure-JAX reference (PyTorch training-mode forward semantics) for verification.
# ----------------------------------------------------------------------------
def _reference(x_ncdhw, weight, gamma, beta, *, stride, padding, eps=1e-3):
    w_oidhw = jnp.transpose(weight, (4, 3, 0, 1, 2))  # (Cout, Cin, kt, kh, kw)
    conv = lax.conv_general_dilated(
        x_ncdhw, w_oidhw,
        window_strides=(stride,) * 3,
        padding=[(padding, padding)] * 3,
        dimension_numbers=("NCDHW", "OIDHW", "NCDHW"),
    )
    mean = jnp.mean(conv, axis=(0, 2, 3, 4), keepdims=True)
    var = jnp.mean((conv - mean) ** 2, axis=(0, 2, 3, 4), keepdims=True)
    g = gamma.reshape(1, -1, 1, 1, 1)
    b = beta.reshape(1, -1, 1, 1, 1)
    return jnp.maximum((conv - mean) * lax.rsqrt(var + eps) * g + b, 0.0)


if __name__ == "__main__":
    key = jax.random.PRNGKey(0)
    k_x, k_w, k_g, k_b = jax.random.split(key, 4)

    # BasicConv3d(in_planes=4, out_planes=8, kernel_size=3, stride=1, padding=1)
    N, Cin, D, H, W = 2, 4, 8, 16, 16
    Cout, K, STRIDE, PAD = 8, 3, 1, 1

    x = jax.random.normal(k_x, (N, Cin, D, H, W), dtype=jnp.float32)
    # conv weight stored as (kt, kh, kw, Cin, Cout)
    weight = 0.05 * jax.random.normal(k_w, (K, K, K, Cin, Cout), dtype=jnp.float32)
    gamma = 1.0 + 0.1 * jax.random.normal(k_g, (Cout,), dtype=jnp.float32)
    beta = 0.1 * jax.random.normal(k_b, (Cout,), dtype=jnp.float32)

    out = basic_conv3d(x, weight, gamma, beta, stride=STRIDE, padding=PAD, eps=1e-3)
    out = jax.block_until_ready(out)

    ref = _reference(x, weight, gamma, beta, stride=STRIDE, padding=PAD, eps=1e-3)
    assert out.shape == (N, Cout, D, H, W), out.shape
    err = float(jnp.max(jnp.abs(out - ref)))
    assert jnp.allclose(out, ref, atol=2e-3, rtol=2e-3), err

    print("KERNEL_OK")
</pallas_src>

<mosaic_0001>
module attributes {stable_mosaic.version = 11 : i64} {
  func.func @_conv_stats_kernel(%arg0: i32, %arg1: memref<64x648xf32, #tpu.memory_space<vmem>>, %arg2: memref<648x128xf32, #tpu.memory_space<vmem>>, %arg3: memref<64x128xf32, #tpu.memory_space<vmem>>, %arg4: memref<1x2x128xf32, #tpu.memory_space<vmem>>) attributes {dimension_semantics = [#tpu.dimension_semantics<parallel>], iteration_bounds = array<i64: 4>, scalar_prefetch = 0 : i64, scratch_operands = 0 : i64, tpu.core_type = #tpu.core_type<tc>, window_params = [{transform_indices = @transform_0, window_bounds = array<i64: 64, 648>}, {pipeline_mode = #tpu.pipeline_mode<synchronous>, transform_indices = @transform_1, window_bounds = array<i64: 648, 128>}, {transform_indices = @transform_2, window_bounds = array<i64: 64, 128>}, {transform_indices = @transform_3, window_bounds = array<i64: 1, 2, 128>}]} {
    %c0 = arith.constant 0 : index
    %c0_0 = arith.constant 0 : index
    %0 = vector.load %arg1[%c0, %c0_0] : memref<64x648xf32, #tpu.memory_space<vmem>>, vector<64x648xf32>
    %c0_1 = arith.constant 0 : index
    %c0_2 = arith.constant 0 : index
    %1 = vector.load %arg2[%c0_1, %c0_2] : memref<648x128xf32, #tpu.memory_space<vmem>>, vector<648x128xf32>
    %cst = arith.constant dense<0.000000e+00> : vector<64x128xf32>
    %2 = tpu.matmul %0, %1, %cst {dimension_numbers = #tpu.dot_dimension_numbers<[1], [0], [0], [1], [0, 0, 1, 1], [], []>} : vector<64x648xf32>, vector<648x128xf32>, vector<64x128xf32> -> vector<64x128xf32>
    %c0_3 = arith.constant 0 : index
    %c0_4 = arith.constant 0 : index
    %3 = vector.load %arg3[%c0_3, %c0_4] : memref<64x128xf32, #tpu.memory_space<vmem>>, vector<64x128xf32>
    tpu.vector_store %arg3[%c0_3, %c0_4], %2 {strides = array<i32>} : memref<64x128xf32, #tpu.memory_space<vmem>>, vector<64x128xf32>,
    %cst_5 = arith.constant dense<0.000000e+00> : vector<128xf32>
    %4 = vector.multi_reduction <add>, %2, %cst_5 [0] : vector<64x128xf32> to vector<128xf32>
    %5 = vector.shape_cast %4 : vector<128xf32> to vector<1x128xf32>
    %6 = arith.mulf %2, %2 : vector<64x128xf32>
    %cst_6 = arith.constant dense<0.000000e+00> : vector<128xf32>
    %7 = vector.multi_reduction <add>, %6, %cst_6 [0] : vector<64x128xf32> to vector<128xf32>
    %8 = vector.shape_cast %7 : vector<128xf32> to vector<1x128xf32>
    %9 = tpu.concatenate %5, %8 in 0 : vector<1x128xf32>, vector<1x128xf32> -> vector<2x128xf32>
    %c0_7 = arith.constant 0 : index
    %c0_8 = arith.constant 0 : index
    %c0_9 = arith.constant 0 : index
    %10 = vector.load %arg4[%c0_7, %c0_8, %c0_9] : memref<1x2x128xf32, #tpu.memory_space<vmem>>, vector<1x2x128xf32>
    %11 = vector.shape_cast %10 : vector<1x2x128xf32> to vector<2x128xf32>
    %12 = vector.shape_cast %9 : vector<2x128xf32> to vector<1x2x128xf32>
    tpu.vector_store %arg4[%c0_7, %c0_8, %c0_9], %12 {strides = array<i32>} : memref<1x2x128xf32, #tpu.memory_space<vmem>>, vector<1x2x128xf32>,
    return
  }
  func.func @transform_0(%arg0: i32) -> (i32, i32) {
    %c0_i32 = arith.constant 0 : i32
    %c0_i32_0 = arith.constant 0 : i32
    return %arg0, %c0_i32 : i32, i32
  }
  func.func @transform_1(%arg0: i32) -> (i32, i32) {
    %c0_i32 = arith.constant 0 : i32
    %c0_i32_0 = arith.constant 0 : i32
    %c0_i32_1 = arith.constant 0 : i32
    return %c0_i32, %c0_i32_0 : i32, i32
  }
  func.func @transform_2(%arg0: i32) -> (i32, i32) {
    %c0_i32 = arith.constant 0 : i32
    %c0_i32_0 = arith.constant 0 : i32
    return %arg0, %c0_i32 : i32, i32
  }
  func.func @transform_3(%arg0: i32) -> (i32, i32, i32) {
    %c0_i32 = arith.constant 0 : i32
    %c0_i32_0 = arith.constant 0 : i32
    %c0_i32_1 = arith.constant 0 : i32
    return %arg0, %c0_i32, %c0_i32_0 : i32, i32, i32
  }
}

</mosaic_0001>

<bundles_post_ra>
// kernel: tpu_custom_call.1
= control target key start
LH: loop header
LB: loop body
LE: loop exit
PB: predicated region body
PF: predicated region fallthrough
CT: control target
= control target key end

     0   :  { %9 = vsyncpa [#allocation3], 0  ;;  %s1410_s0 = inlined_call_operand.vmem [shape: f32[256,648], index: 0, kind: input, shape index: {}]   ;;  %s1411_s1 = inlined_call_operand.vmem [shape: f32[648,128], index: 1, kind: input, shape index: {}]   ;;  %s1412_s2 = inlined_call_operand.hbm [shape: f32[256,128], index: 2, kind: output, shape index: {0}]   ;;  %s1413_s3 = inlined_call_operand.hbm [shape: f32[4,2,128], index: 3, kind: output, shape index: {1}]  }
   0x1   :  { %11 = vsyncpa [#allocation3 + $0x1], 0 }
   0x2   :  { %12 = vsyncpa [#allocation5], 0 }
   0x3   :  { %14 = vsyncpa [#allocation5 + $0x1], 0  ;;  %s982_s12 = smov 0   ;;  %s984_s13 = smov 0  }
   0x4   :  { %s986_s14 = smov 0   ;;  %s988_s15 = smov 0  }
   0x5 LB: > { %s1003_s16 = sadd.s32 4294967295, %s958_s15   ;;  %s761_s17 = sadd.s32 4294967294, %s958_s15   ;;  %s958_s15 = sphi %s988_s15, %s1419_s15   ;;  %s954_s14 = sphi %s986_s14, %s1418_s14   ;;  %s950_s13 = sphi %s984_s13, %s1417_s13   ;;  %s946_s12 = sphi %s982_s12, %s1416_s12  }
   0x6   : > { %s1007_s18 = sadd.s32 1, %s958_s15   ;;  %s74_s19 = sadd.s32 1, %s954_s14 }
   0x7   : > { %s71_s20 = ssub.s32 %s958_s15, %s1007_s18  ;;  %p84_p0 = scmp.ne.s32.totalorder %s954_s14, %s950_s13 }
   0x8   : > { %p72_p1 = scmp.eq.s32.totalorder %s71_s20, 0  ;;  %p85_p2 = scmp.eq.s32.totalorder %s1003_s16, 3 }
   0x9   : > { %p90_p3 = scmp.ne.s32.totalorder %s950_s13, %s946_s12  ;;  %p91_p4 = scmp.eq.s32.totalorder %s761_s17, 3 }
   0xa   : > { %s1018_s21 = scalar_select %p72_p1, %s954_s14, %s74_s19  }
   0xb   : > { %p1020_p5 = por %p85_p2, %p84_p0  ;;  %p1024_p6 = por %p91_p4, %p90_p3 }
   0xc   : > { %p764_p7 = scmp.ge.s32.totalorder %s958_s15, 1  ;;  %p148_p8 = scmp.lt.s32.totalorder %s958_s15, 5 }
   0xe   : > { %p149_p9 = pnand %p764_p7, %p148_p8 }
   0xf   : > { %s767_s7 = sshll.u32 (!%p149_p9), %s1003_s16, 3  ;;  %s784_s11 = sshll.u32 (!%p149_p9), %s1003_s16, 6 }
  0x10   : > { %152 = sbr.rel (%p149_p9) target bundleno = 301 (0x12d), region = 28  ;;  %p179_p10 = scmp.lt.s32.totalorder (!%p149_p9), %s767_s7, 31 }
  0x11   : > { %s648_s20 = scalar_lea.hbm (!%p149_p9), %s1412_s2, %s784_s11  ;;  %s884_s4 = scalar_lea.hbm (!%p149_p9), %s1412_s2, 256 }
  0x12   : > { %s651_s25 = sshll.u32 (!%p149_p9), %s648_s20, 4  ;;  %s652_s25 = int_to_ptr.hbm [resolvable:$true] %s651_s25 }
  0x13   : > { %s878_s27 = sshra.s32 (!%p149_p9), %s652_s25, 4  ;;  %s879_s27 = int_to_ptr.hbm [resolvable:$true] %s878_s27 }
  0x14   : > { %s880_s28 = scalar_lea.hbm (!%p149_p9), %s879_s27, 64  ;;  %p885_p0 = scmp.lt.s32.totalorder (!%p149_p9), %s879_s27, %s1412_s2 }
  0x15   : > { %v249_v0 = vld [vmem:[%s1411_s1 + $0x78] sm:$0xff]  ;;  %v248_v2 = vld [vmem:[%s1411_s1 + $0x70] sm:$0xff]  ;;  %v247_v4 = vld [vmem:[%s1411_s1 + $0x68] sm:$0xff]  ;;  %s1421_s7 = smov (!%p179_p10, %s767_s7), 31  ;;  %vm315_vm0 = vcmask 64512   ;;  %p881_p11 = scmp.ne.s32.totalorder %s879_s27, %s880_s28 }
  0x16   : > { %v265_v1 = vld [vmem:[%s1411_s1 + $0xf8] sm:$0xff]  ;;  %785 = vmatpush.msra.mxu2 %v249_v0  ;;  %v264_v3 = vld [vmem:[%s1411_s1 + $0xf0] sm:$0xff]  ;;  %v263_v5 = vld [vmem:[%s1411_s1 + $0xe8] sm:$0xff]  ;;  %340 = vmatpush.msra.mxu0 %v249_v0  ;;  %s817_s24 = smul.u32 48, %s1421_s7  ;;  %p886_p1 = scmp.lt.s32.totalorder %s884_s4, %s880_s28 }
  0x17   : > { %801 = vmatpush.msra.mxu3 %v265_v1  ;;  %381 = vmatpush.msra.mxu1 %v265_v1  ;;  %v246_v6 = vld [vmem:[%s1411_s1 + $0x60] sm:$0xff]  ;;  %v245_v8 = vld [vmem:[%s1411_s1 + $0x58] sm:$0xff]  ;;  %v244_v10 = vld [vmem:[%s1411_s1 + $0x50] sm:$0xff]  ;;  %p882_p12 = pnand %p881_p11, %p1020_p5 }
  0x18   : > { %786 = vmatpush.msra.mxu2 %v248_v2  ;;  %v262_v7 = vld [vmem:[%s1411_s1 + $0xe0] sm:$0xff]  ;;  %341 = vmatpush.msra.mxu0 %v248_v2  ;;  %v261_v9 = vld [vmem:[%s1411_s1 + $0xd8] sm:$0xff]  ;;  %v260_v11 = vld [vmem:[%s1411_s1 + $0xd0] sm:$0xff]  ;;  %s1124_s8 = scalar_lea.vmem %s1410_s0, %s817_s24  ;;  %p887_p2 = por %p886_p1, %p885_p0 }
  0x19   : > { %802 = vmatpush.msra.mxu3 %v264_v3  ;;  %382 = vmatpush.msra.mxu1 %v264_v3  ;;  %v243_v12 = vld [vmem:[%s1411_s1 + $0x48] sm:$0xff]  ;;  %v242_v14 = vld [vmem:[%s1411_s1 + $0x40] sm:$0xff]  ;;  %v241_v16 = vld [vmem:[%s1411_s1 + $0x38] sm:$0xff]  ;;  %p883_p13 = pneg %p882_p12 }
  0x1a   : > { %787 = vmatpush.msra.mxu2 %v247_v4  ;;  %342 = vmatpush.msra.mxu0 %v247_v4  ;;  %v259_v13 = vld [vmem:[%s1411_s1 + $0xc8] sm:$0xff]  ;;  %v258_v15 = vld [vmem:[%s1411_s1 + $0xc0] sm:$0xff]  ;;  %v257_v17 = vld [vmem:[%s1411_s1 + $0xb8] sm:$0xff] }
  0x1b   : > { %803 = vmatpush.msra.mxu3 %v263_v5  ;;  %383 = vmatpush.msra.mxu1 %v263_v5  ;;  %v240_v18 = vld [vmem:[%s1411_s1 + $0x30] sm:$0xff]  ;;  %v239_v20 = vld [vmem:[%s1411_s1 + $0x28] sm:$0xff]  ;;  %v238_v22 = vld [vmem:[%s1411_s1 + $0x20] sm:$0xff]  ;;  %p888_p3 = pnand %p887_p2, %p883_p13 }
  0x1c   : > { %788 = vmatpush.msra.mxu2 %v246_v6  ;;  %343 = vmatpush.msra.mxu0 %v246_v6  ;;  %v256_v19 = vld [vmem:[%s1411_s1 + $0xb0] sm:$0xff]  ;;  %v255_v21 = vld [vmem:[%s1411_s1 + $0xa8] sm:$0xff]  ;;  %v254_v23 = vld [vmem:[%s1411_s1 + $0xa0] sm:$0xff] }
  0x1d   : > { %804 = vmatpush.msra.mxu3 %v262_v7  ;;  %384 = vmatpush.msra.mxu1 %v262_v7  ;;  %v237_v24 = vld [vmem:[%s1411_s1 + $0x18] sm:$0xff]  ;;  %v236_v26 = vld [vmem:[%s1411_s1 + $0x10] sm:$0xff]  ;;  %v235_v28 = vld [vmem:[%s1411_s1 + $0x8] sm:$0xff] }
  0x1e   : > { %789 = vmatpush.msra.mxu2 %v245_v8  ;;  %344 = vmatpush.msra.mxu0 %v245_v8  ;;  %v253_v25 = vld [vmem:[%s1411_s1 + $0x98] sm:$0xff]  ;;  %v252_v27 = vld [vmem:[%s1411_s1 + $0x90] sm:$0xff]  ;;  %v251_v29 = vld [vmem:[%s1411_s1 + $0x88] sm:$0xff] }
  0x1f   : > { %805 = vmatpush.msra.mxu3 %v261_v9  ;;  %385 = vmatpush.msra.mxu1 %v261_v9  ;;  %v234_v30 = vld [vmem:[%s1411_s1] sm:$0xff]  ;;  %v211_v33 = vld [vmem:[%s1124_s8 + $0xc8] sm:$0xff]  ;;  %v281_v34 = vld [vmem:[%s1411_s1 + $0x178] sm:$0xff] }
  0x20   : > { %790 = vmatpush.msra.mxu2 %v244_v10  ;;  %345 = vmatpush.msra.mxu0 %v244_v10  ;;  %v250_v31 = vld [vmem:[%s1411_s1 + $0x80] sm:$0xff]  ;;  %v297_v35 = vld [vmem:[%s1411_s1 + $0x1f8] sm:$0xff]  ;;  %v280_v36 = vld [vmem:[%s1411_s1 + $0x170] sm:$0xff] }
  0x21   : > { %806 = vmatpush.msra.mxu3 %v260_v11  ;;  %386 = vmatpush.msra.mxu1 %v260_v11  ;;  %v210_v32 = vld [vmem:[%s1124_s8 + $0xc0] sm:$0xff]  ;;  %v296_v37 = vld [vmem:[%s1411_s1 + $0x1f0] sm:$0xff]  ;;  %v187_v39 = vld [vmem:[%s1124_s8 + $0x8] sm:$0xff] }
  0x22   : > { %791 = vmatpush.msra.mxu2 %v243_v12  ;;  %346 = vmatpush.msra.mxu0 %v243_v12  ;;  %v186_v38 = vld [vmem:[%s1124_s8] sm:$0xff]  ;;  %v279_v40 = vld [vmem:[%s1411_s1 + $0x168] sm:$0xff]  ;;  %v313_v42 = vld [vmem:[%s1411_s1 + $0x278] sm:$0xff] }
  0x23   : > { %807 = vmatpush.msra.mxu3 %v259_v13  ;;  %387 = vmatpush.msra.mxu1 %v259_v13  ;;  %v295_v41 = vld [vmem:[%s1411_s1 + $0x1e8] sm:$0xff]  ;;  %v314_v43 = vld [vmem:[%s1411_s1 + $0x280] sm:$0xff]  ;;  %v216_v46 = vld [vmem:[%s1124_s8 + $0xf0] sm:$0xff] }
  0x24   : > { %792 = vmatpush.msra.mxu2 %v242_v14  ;;  %347 = vmatpush.msra.mxu0 %v242_v14  ;;  %v278_v44 = vld [vmem:[%s1411_s1 + $0x160] sm:$0xff]  ;;  %v217_v47 = vld [vmem:[%s1124_s8 + $0xf8] sm:$0xff]  ;;  %v312_v50 = vld [vmem:[%s1411_s1 + $0x270] sm:$0xff] }
  0x25   : > { %808 = vmatpush.msra.mxu3 %v258_v15  ;;  %388 = vmatpush.msra.mxu1 %v258_v15  ;;  %v294_v45 = vld [vmem:[%s1411_s1 + $0x1e0] sm:$0xff]  ;;  %v277_v48 = vld [vmem:[%s1411_s1 + $0x158] sm:$0xff]  ;;  %v276_v51 = vld [vmem:[%s1411_s1 + $0x150] sm:$0xff] }
  0x26   : > { %793 = vmatpush.msra.mxu2 %v241_v16  ;;  %348 = vmatpush.msra.mxu0 %v241_v16  ;;  %v293_v49 = vld [vmem:[%s1411_s1 + $0x1d8] sm:$0xff]  ;;  %v292_v52 = vld [vmem:[%s1411_s1 + $0x1d0] sm:$0xff]  ;;  %v311_v53 = vld [vmem:[%s1411_s1 + $0x268] sm:$0xff] }
  0x27   : > { %809 = vmatpush.msra.mxu3 %v257_v17  ;;  %389 = vmatpush.msra.mxu1 %v257_v17  ;;  %v193_v54 = vld [vmem:[%s1124_s8 + $0x38] sm:$0xff]  ;;  %v275_v55 = vld [vmem:[%s1411_s1 + $0x148] sm:$0xff]  ;;  %v310_v57 = vld [vmem:[%s1411_s1 + $0x260] sm:$0xff] }
  0x28   : > { %794 = vmatpush.msra.mxu2 %v240_v18  ;;  %349 = vmatpush.msra.mxu0 %v240_v18  ;;  %v291_v56 = vld [vmem:[%s1411_s1 + $0x1c8] sm:$0xff]  ;;  %v274_v58 = vld [vmem:[%s1411_s1 + $0x140] sm:$0xff]  ;;  %v273_v62 = vld [vmem:[%s1411_s1 + $0x138] sm:$0xff] }
  0x29   : > { %810 = vmatpush.msra.mxu3 %v256_v19  ;;  %390 = vmatpush.msra.mxu1 %v256_v19  ;;  %v290_v59 = vld [vmem:[%s1411_s1 + $0x1c0] sm:$0xff]  ;;  %v223_v61 = vld [vmem:[%s1124_s8 + $0x128] sm:$0xff]  ;;  %v192_v63 = vld [vmem:[%s1124_s8 + $0x30] sm:$0xff] }
  0x2a   : > { %795 = vmatpush.msra.mxu2 %v239_v20  ;;  %350 = vmatpush.msra.mxu0 %v239_v20  ;;  %v222_v60 = vld [vmem:[%s1124_s8 + $0x120] sm:$0xff]  ;;  %v289_v0 = vld [vmem:[%s1411_s1 + $0x1b8] sm:$0xff]  ;;  %v272_v2 = vld [vmem:[%s1411_s1 + $0x130] sm:$0xff] }
  0x2b   : > { %811 = vmatpush.msra.mxu3 %v255_v21  ;;  %391 = vmatpush.msra.mxu1 %v255_v21  ;;  %v309_v1 = vld [vmem:[%s1411_s1 + $0x258] sm:$0xff]  ;;  %v288_v3 = vld [vmem:[%s1411_s1 + $0x1b0] sm:$0xff]  ;;  %v271_v5 = vld [vmem:[%s1411_s1 + $0x128] sm:$0xff] }
  0x2c   : > { %796 = vmatpush.msra.mxu2 %v238_v22  ;;  %351 = vmatpush.msra.mxu0 %v238_v22  ;;  %v308_v4 = vld [vmem:[%s1411_s1 + $0x250] sm:$0xff]  ;;  %v199_v6 = vld [vmem:[%s1124_s8 + $0x68] sm:$0xff]  ;;  %v270_v9 = vld [vmem:[%s1411_s1 + $0x120] sm:$0xff] }
  0x2d   : > { %812 = vmatpush.msra.mxu3 %v254_v23  ;;  %392 = vmatpush.msra.mxu1 %v254_v23  ;;  %v287_v7 = vld [vmem:[%s1411_s1 + $0x1a8] sm:$0xff]  ;;  %v228_v10 = vld [vmem:[%s1124_s8 + $0x150] sm:$0xff]  ;;  %v229_v11 = vld [vmem:[%s1124_s8 + $0x158] sm:$0xff] }
  0x2e   : > { %797 = vmatpush.msra.mxu2 %v237_v24  ;;  %352 = vmatpush.msra.mxu0 %v237_v24  ;;  %v307_v8 = vld [vmem:[%s1411_s1 + $0x248] sm:$0xff]  ;;  %v269_v12 = vld [vmem:[%s1411_s1 + $0x118] sm:$0xff]  ;;  %v286_v13 = vld [vmem:[%s1411_s1 + $0x1a0] sm:$0xff] }
  0x2f   : > { %813 = vmatpush.msra.mxu3 %v253_v25  ;;  %393 = vmatpush.msra.mxu1 %v253_v25  ;;  %v306_v14 = vld [vmem:[%s1411_s1 + $0x240] sm:$0xff]  ;;  %v268_v16 = vld [vmem:[%s1411_s1 + $0x110] sm:$0xff]  ;;  %v285_v17 = vld [vmem:[%s1411_s1 + $0x198] sm:$0xff] }
  0x30   : > { %798 = vmatpush.msra.mxu2 %v236_v26  ;;  %353 = vmatpush.msra.mxu0 %v236_v26  ;;  %v198_v15 = vld [vmem:[%s1124_s8 + $0x60] sm:$0xff]  ;;  %v305_v18 = vld [vmem:[%s1411_s1 + $0x238] sm:$0xff]  ;;  %v267_v19 = vld [vmem:[%s1411_s1 + $0x108] sm:$0xff] }
  0x31   : > { %814 = vmatpush.msra.mxu3 %v252_v27  ;;  %394 = vmatpush.msra.mxu1 %v252_v27  ;;  %v205_v20 = vld [vmem:[%s1124_s8 + $0x98] sm:$0xff]  ;;  %v284_v21 = vld [vmem:[%s1411_s1 + $0x190] sm:$0xff]  ;;  %v266_v23 = vld [vmem:[%s1411_s1 + $0x100] sm:$0xff] }
  0x32   : > { %799 = vmatpush.msra.mxu2 %v235_v28  ;;  %354 = vmatpush.msra.mxu0 %v235_v28  ;;  %v304_v22 = vld [vmem:[%s1411_s1 + $0x230] sm:$0xff]  ;;  %v283_v24 = vld [vmem:[%s1411_s1 + $0x188] sm:$0xff]  ;;  %v282_v27 = vld [vmem:[%s1411_s1 + $0x180] sm:$0xff] }
  0x33   : > { %815 = vmatpush.msra.mxu3 %v251_v29  ;;  %395 = vmatpush.msra.mxu1 %v251_v29  ;;  %v303_v25 = vld [vmem:[%s1411_s1 + $0x228] sm:$0xff]  ;;  %v188_v26 = vld [vmem:[%s1124_s8 + $0x10] sm:$0xff]  ;;  %v302_v28 = vld [vmem:[%s1411_s1 + $0x220] sm:$0xff] }
  0x34   : > { %800 = vmatpush.msra.mxu2 %v234_v30  ;;  %355 = vmatpush.msra.mxu0 %v234_v30  ;;  %v204_v29 = vld [vmem:[%s1124_s8 + $0x90] sm:$0xff]  ;;  %v189_v30 = vld [vmem:[%s1124_s8 + $0x18] sm:$0xff] }
  0x35   : > { %816 = vmatpush.msra.mxu3 %v250_v31  ;;  %368 = vmatmul.f32.vlgmr.msra.gmra.mxu2 %v210_v32  ;;  %v191_v32 = vld [vmem:[%s1124_s8 + $0x28] sm:$0xff] }
  0x36   : > { %409 = vmatmul.f32.vlgmr.msra.gmra.mxu3 %v211_v33  ;;  %422 = vmatpush.msrb.mxu2 %v281_v34  ;;  %v300_v33 = vld [vmem:[%s1411_s1 + $0x210] sm:$0xff]  ;;  %v299_v34 = vld [vmem:[%s1411_s1 + $0x208] sm:$0xff] }
  0x37   : > { %463 = vmatpush.msrb.mxu3 %v297_v35  ;;  %396 = vmatpush.msra.mxu1 %v250_v31  ;;  %v301_v31 = vld [vmem:[%s1411_s1 + $0x218] sm:$0xff]  ;;  %v194_v35 = vld [vmem:[%s1124_s8 + $0x40] sm:$0xff] }
  0x38   : > { %423 = vmatpush.msrb.mxu2 %v280_v36  ;;  %356 = vmatmul.f32.vlgmr.msra.gmra.mxu0 %v186_v38  ;;  %v298_v36 = vld [vmem:[%s1411_s1 + $0x200] sm:$0xff] }
  0x39   : > { %464 = vmatpush.msrb.mxu3 %v296_v37  ;;  %397 = vmatmul.f32.vlgmr.msra.gmra.mxu1 %v187_v39  ;;  %v195_v37 = vld [vmem:[%s1124_s8 + $0x48] sm:$0xff]  ;;  %v190_v38 = vld [vmem:[%s1124_s8 + $0x20] sm:$0xff]  ;;  %v197_v39 = vld [vmem:[%s1124_s8 + $0x58] sm:$0xff] }
  0x3a   : > { %424 = vmatpush.msrb.mxu2 %v279_v40  ;;  %504 = vmatpush.msrb.mxu0 %v313_v42  ;;  %v200_v40 = vld [vmem:[%s1124_s8 + $0x70] sm:$0xff] }
  0x3b   : > { %465 = vmatpush.msrb.mxu3 %v295_v41  ;;  %560 = vmatpush.msrb.mxu1 %v314_v43  ;;  %v201_v41 = vld [vmem:[%s1124_s8 + $0x78] sm:$0xff]  ;;  %v196_v42 = vld [vmem:[%s1124_s8 + $0x50] sm:$0xff]  ;;  %v203_v43 = vld [vmem:[%s1124_s8 + $0x88] sm:$0xff] }
  0x3c   : > { %425 = vmatpush.msrb.mxu2 %v278_v44  ;;  %505 = vmatpush.msrb.mxu0 %v312_v50  ;;  %v206_v44 = vld [vmem:[%s1124_s8 + $0xa0] sm:$0xff]  ;;  %v208_v50 = vld [vmem:[%s1124_s8 + $0xb0] sm:$0xff] }
  0x3d   : > { %466 = vmatpush.msrb.mxu3 %v294_v45  ;;  %371 = vmatmul.f32.gmra.mxu2 %v216_v46  ;;  %v207_v45 = vld [vmem:[%s1124_s8 + $0xa8] sm:$0xff]  ;;  %v202_v46 = vld [vmem:[%s1124_s8 + $0x80] sm:$0xff] }
  0x3e   : > { %412 = vmatmul.f32.gmra.mxu3 %v217_v47  ;;  %426 = vmatpush.msrb.mxu2 %v277_v48  ;;  %v209_v47 = vld [vmem:[%s1124_s8 + $0xb8] sm:$0xff]  ;;  %v212_v48 = vld [vmem:[%s1124_s8 + $0xd0] sm:$0xff] }
  0x3f   : > { %467 = vmatpush.msrb.mxu3 %v293_v49  ;;  %506 = vmatpush.msrb.mxu0 %v311_v53  ;;  %v213_v49 = vld [vmem:[%s1124_s8 + $0xd8] sm:$0xff]  ;;  %v219_v53 = vld [vmem:[%s1124_s8 + $0x108] sm:$0xff] }
  0x40   : > { %427 = vmatpush.msrb.mxu2 %v276_v51  ;;  %359 = vmatmul.f32.gmra.mxu0 %v192_v63  ;;  %v215_v51 = vld [vmem:[%s1124_s8 + $0xe8] sm:$0xff]  ;;  %v233_v63 = vld [vmem:[%s1124_s8 + $0x178] sm:$0xff] }
  0x41   : > { %468 = vmatpush.msrb.mxu3 %v292_v52  ;;  %400 = vmatmul.f32.gmra.mxu1 %v193_v54  ;;  %v218_v52 = vld [vmem:[%s1124_s8 + $0x100] sm:$0xff] }
  0x42   : > { %428 = vmatpush.msrb.mxu2 %v275_v55  ;;  %507 = vmatpush.msrb.mxu0 %v310_v57  ;;  %v214_v54 = vld [vmem:[%s1124_s8 + $0xe0] sm:$0xff]  ;;  %v221_v55 = vld [vmem:[%s1124_s8 + $0x118] sm:$0xff] }
  0x43   : > { %469 = vmatpush.msrb.mxu3 %v291_v56  ;;  %v224_v56 = vld [vmem:[%s1124_s8 + $0x130] sm:$0xff]  ;;  %v225_v57 = vld [vmem:[%s1124_s8 + $0x138] sm:$0xff] }
  0x44   : > { %429 = vmatpush.msrb.mxu2 %v274_v58  ;;  %508 = vmatpush.msrb.mxu0 %v309_v1  ;;  %v220_v58 = vld [vmem:[%s1124_s8 + $0x110] sm:$0xff] }
  0x45   : > { %470 = vmatpush.msrb.mxu3 %v290_v59  ;;  %374 = vmatmul.f32.gmra.mxu2 %v222_v60  ;;  %v227_v59 = vld [vmem:[%s1124_s8 + $0x148] sm:$0xff]  ;;  %v230_v60 = vld [vmem:[%s1124_s8 + $0x160] sm:$0xff] }
  0x46   : > { %415 = vmatmul.f32.gmra.mxu3 %v223_v61  ;;  %430 = vmatpush.msrb.mxu2 %v273_v62  ;;  %v231_v61 = vld [vmem:[%s1124_s8 + $0x168] sm:$0xff]  ;;  %v226_v62 = vld [vmem:[%s1124_s8 + $0x140] sm:$0xff] }
  0x47   : > { %471 = vmatpush.msrb.mxu3 %v289_v0  ;;  %509 = vmatpush.msrb.mxu0 %v308_v4  ;;  %v232_v0 = vld [vmem:[%s1124_s8 + $0x170] sm:$0xff]  ;;  %s1344_s8 = sand.u32 1, %s950_s13  }
  0x48   : > { %431 = vmatpush.msrb.mxu2 %v272_v2  ;;  %362 = vmatmul.f32.gmra.mxu0 %v198_v15  ;;  %s765_s9 = sshll.u32 %s1344_s8, 6  ;;  %s632_s26 = scalar_lea.sflag [#allocation3], %s1344_s8 }
  0x49   : > { %472 = vmatpush.msrb.mxu3 %v288_v3  ;;  %403 = vmatmul.f32.gmra.mxu1 %v199_v6  ;;  %s1347_s10 = scalar_lea.vmem [#allocation2], %s765_s9 }
  0x4a   : > { %432 = vmatpush.msrb.mxu2 %v271_v5  ;;  %510 = vmatpush.msrb.mxu0 %v307_v8  ;;  %s649_s24 = sshll.u32 %s1347_s10, 4  ;;  %s650_s24 = int_to_ptr.vmem [resolvable:$true] %s649_s24 }
  0x4b   : > { %473 = vmatpush.msrb.mxu3 %v287_v7 }
  0x4c   : > { %433 = vmatpush.msrb.mxu2 %v270_v9  ;;  %511 = vmatpush.msrb.mxu0 %v306_v14 }
  0x4d   : > { %377 = vmatmul.f32.gmra.mxu2 %v228_v10  ;;  %474 = vmatpush.msrb.mxu3 %v286_v13 }
  0x4e   : > { %418 = vmatmul.f32.gmra.mxu3 %v229_v11  ;;  %434 = vmatpush.msrb.mxu2 %v269_v12 }
  0x4f   : > { %475 = vmatpush.msrb.mxu3 %v285_v17  ;;  %512 = vmatpush.msrb.mxu0 %v305_v18 }
  0x50   : > { %435 = vmatpush.msrb.mxu2 %v268_v16  ;;  %365 = vmatmul.f32.gmra.mxu0 %v204_v29 }
  0x51   : > { %406 = vmatmul.f32.gmra.mxu1 %v205_v20  ;;  %476 = vmatpush.msrb.mxu3 %v284_v21 }
  0x52   : > { %436 = vmatpush.msrb.mxu2 %v267_v19  ;;  %513 = vmatpush.msrb.mxu0 %v304_v22 }
  0x53   : > { %477 = vmatpush.msrb.mxu3 %v283_v24 }
  0x54   : > { %437 = vmatpush.msrb.mxu2 %v266_v23  ;;  %514 = vmatpush.msrb.mxu0 %v303_v25 }
  0x55   : > { %438 = vmatmul.f32.vlgmr.msrb.gmra.mxu2 %v188_v26  ;;  %478 = vmatpush.msrb.mxu3 %v282_v27 }
  0x56   : > { %515 = vmatpush.msrb.mxu0 %v302_v28  ;;  %479 = vmatmul.f32.vlgmr.msrb.gmra.mxu3 %v189_v30 }
  0x58   : > { %516 = vmatpush.msrb.mxu0 %v301_v31 }
  0x59   : > { %769 = vmatmul.msk.f32.vlgmr.msrb.gmra.mxu1 %vm315_vm0, %v191_v32 }
  0x5a   : > { %517 = vmatpush.msrb.mxu0 %v300_v33 }
  0x5c   : > { %518 = vmatpush.msrb.mxu0 %v299_v34 }
  0x5d   : > { %441 = vmatmul.f32.gmra.mxu2 %v194_v35 }
  0x5e   : > { %519 = vmatpush.msrb.mxu0 %v298_v36  ;;  %482 = vmatmul.f32.gmra.mxu3 %v195_v37 }
  0x5f   : > { %520 = vmatmul.f32.vlgmr.msrb.gmra.mxu0 %v190_v38 }
  0x61   : > { %770 = vmatmul.msk.f32.gmra.mxu1 %vm315_vm0, %v197_v39 }
  0x65   : > { %444 = vmatmul.f32.gmra.mxu2 %v200_v40 }
  0x66   : > { %485 = vmatmul.f32.gmra.mxu3 %v201_v41 }
  0x67   : > { %523 = vmatmul.f32.gmra.mxu0 %v196_v42 }
  0x69   : > { %771 = vmatmul.msk.f32.gmra.mxu1 %vm315_vm0, %v203_v43 }
  0x6d   : > { %447 = vmatmul.f32.gmra.mxu2 %v206_v44 }
  0x6e   : > { %488 = vmatmul.f32.gmra.mxu3 %v207_v45 }
  0x6f   : > { %526 = vmatmul.f32.gmra.mxu0 %v202_v46 }
  0x71   : > { %772 = vmatmul.msk.f32.gmra.mxu1 %vm315_vm0, %v209_v47 }
  0x75   : > { %450 = vmatmul.f32.gmra.mxu2 %v212_v48 }
  0x76   : > { %491 = vmatmul.f32.gmra.mxu3 %v213_v49 }
  0x77   : > { %529 = vmatmul.f32.gmra.mxu0 %v208_v50 }
  0x79   : > { %773 = vmatmul.msk.f32.gmra.mxu1 %vm315_vm0, %v215_v51 }
  0x7d   : > { %453 = vmatmul.f32.gmra.mxu2 %v218_v52 }
  0x7e   : > { %494 = vmatmul.f32.gmra.mxu3 %v219_v53 }
  0x7f   : > { %532 = vmatmul.f32.gmra.mxu0 %v214_v54 }
  0x81   : > { %774 = vmatmul.msk.f32.gmra.mxu1 %vm315_vm0, %v221_v55 }
  0x85   : > { %456 = vmatmul.f32.gmra.mxu2 %v224_v56 }
  0x86   : > { %497 = vmatmul.f32.gmra.mxu3 %v225_v57 }
  0x87   : > { %535 = vmatmul.f32.gmra.mxu0 %v220_v58 }
  0x89   : > { %775 = vmatmul.msk.f32.gmra.mxu1 %vm315_vm0, %v227_v59 }
  0x8d   : > { %459 = vmatmul.f32.gmra.mxu2 %v230_v60 }
  0x8e   : > { %500 = vmatmul.f32.gmra.mxu3 %v231_v61 }
  0x8f   : > { %538 = vmatmul.f32.gmra.mxu0 %v226_v62 }
  0x91   : > { %776 = vmatmul.msk.f32.gmra.mxu1 %vm315_vm0, %v233_v63 }
  0x97   : > { %541 = vmatmul.f32.gmra.mxu0 %v232_v0 }
  0xb5   : > { %v357_v4 = vpop.f32.mrf.mxu0 }
  0xb6   : > { %v398_v1 = vpop.f32.mrf.mxu1 }
  0xb7   : > { %v399_v18 = vadd.f32 %v398_v1, %v357_v4 }
  0xb8   : > { %v369_v2 = vpop.f32.mrf.mxu2 }
  0xb9   : > { %v410_v3 = vpop.f32.mrf.mxu3 }
  0xba   : > { %v411_v53 = vadd.f32 %v410_v3, %v369_v2 }
  0xbd   : > { %v360_v8 = vpop.f32.mrf.mxu0 }
  0xbe   : > { %v401_v5 = vpop.f32.mrf.mxu1 }
  0xbf   : > { %v402_v26 = vadd.f32 %v401_v5, %v360_v8 }
  0xc0   : > { %v372_v6 = vpop.f32.mrf.mxu2 }
  0xc1   : > { %v413_v7 = vpop.f32.mrf.mxu3 }
  0xc2   : > { %v414_v61 = vadd.f32 %v413_v7, %v372_v6 }
  0xc5   : > { %v363_v12 = vpop.f32.mrf.mxu0 }
  0xc6   : > { %v404_v9 = vpop.f32.mrf.mxu1 }
  0xc7   : > { %v405_v35 = vadd.f32 %v404_v9, %v363_v12 }
  0xc8   : > { %v1335_v10 = vpop.f32.mrf.mxu2 }
  0xc9   : > { %v1337_v11 = vpop.f32.mrf.mxu3 }
  0xca   : > { %v417_v2 = vadd.f32 %v1337_v11, %v1335_v10 }
  0xcd   : > { %v366_v16 = vpop.f32.mrf.mxu0 }
  0xce   : > { %v407_v13 = vpop.f32.mrf.mxu1 }
  0xcf   : > { %v408_v44 = vadd.f32 %v407_v13, %v366_v16 }
  0xd0   : > { %v1339_v14 = vpop.f32.mrf.mxu2 }
  0xd1   : > { %v1341_v15 = vpop.f32.mrf.mxu3 }
  0xd6   : > { %v562_v17 = vpop.f32.mrf.mxu1 }
  0xd8   : > { %v439_v19 = vpop.f32.mrf.mxu2 }
  0xd9   : > { %v440_v20 = vadd.f32 %v439_v19, %v399_v18  ;;  %v480_v21 = vpop.f32.mrf.mxu3 }
  0xdb   : > { %v481_v22 = vadd.f32 %v480_v21, %v440_v20 }
  0xdc   : > { %v521_v23 = vpop.f32.mrf.mxu0 }
  0xdd   : > { %v522_v24 = vadd.f32 %v521_v23, %v481_v22  ;;  %v420_v23 = vadd.f32 %v1341_v15, %v1339_v14 }
  0xde   : > { %v565_v25 = vpop.f32.mrf.mxu1 }
  0xdf   : > { %v563_v27 = vadd.f32 %v562_v17, %v522_v24 }
  0xe0   : > { %v442_v28 = vpop.f32.mrf.mxu2 }
  0xe1   : > { %586 = vst [vmem:[%s1347_s10] sm:$0xff] %v563_v27  ;;  %v443_v29 = vadd.f32 %v442_v28, %v402_v26  ;;  %v483_v30 = vpop.f32.mrf.mxu3  ;;  %v607_v19 = vmul.f32 %v563_v27, %v563_v27 }
  0xe3   : > { %v484_v31 = vadd.f32 %v483_v30, %v443_v29 }
  0xe4   : > { %v524_v32 = vpop.f32.mrf.mxu0 }
  0xe5   : > { %v525_v33 = vadd.f32 %v524_v32, %v484_v31 }
  0xe6   : > { %v568_v34 = vpop.f32.mrf.mxu1 }
  0xe7   : > { %v566_v36 = vadd.f32 %v565_v25, %v525_v33 }
  0xe8   : > { %v445_v37 = vpop.f32.mrf.mxu2 }
  0xe9   : > { %587 = vst [vmem:[%s1347_s10 + $0x8] sm:$0xff] %v566_v36  ;;  %v446_v38 = vadd.f32 %v445_v37, %v405_v35  ;;  %v486_v39 = vpop.f32.mrf.mxu3  ;;  %v608_v6 = vmul.f32 %v566_v36, %v566_v36  ;;  %v594_v20 = vadd.f32 %v566_v36, %v563_v27 }
  0xeb   : > { %v487_v40 = vadd.f32 %v486_v39, %v446_v38  ;;  %v615_v24 = vadd.f32 %v608_v6, %v607_v19 }
  0xec   : > { %v527_v41 = vpop.f32.mrf.mxu0 }
  0xed   : > { %v528_v42 = vadd.f32 %v527_v41, %v487_v40 }
  0xee   : > { %v571_v43 = vpop.f32.mrf.mxu1 }
  0xef   : > { %v569_v45 = vadd.f32 %v568_v34, %v528_v42 }
  0xf0   : > { %v448_v46 = vpop.f32.mrf.mxu2 }
  0xf1   : > { %588 = vst [vmem:[%s1347_s10 + $0x10] sm:$0xff] %v569_v45  ;;  %v449_v47 = vadd.f32 %v448_v46, %v408_v44  ;;  %v489_v48 = vpop.f32.mrf.mxu3  ;;  %v609_v21 = vmul.f32 %v569_v45, %v569_v45  ;;  %v595_v10 = vadd.f32 %v594_v20, %v569_v45 }
  0xf3   : > { %v490_v49 = vadd.f32 %v489_v48, %v449_v47  ;;  %v616_v28 = vadd.f32 %v615_v24, %v609_v21 }
  0xf4   : > { %v530_v50 = vpop.f32.mrf.mxu0 }
  0xf5   : > { %v531_v51 = vadd.f32 %v530_v50, %v490_v49 }
  0xf6   : > { %v574_v52 = vpop.f32.mrf.mxu1 }
  0xf7   : > { %v572_v54 = vadd.f32 %v571_v43, %v531_v51 }
  0xf8   : > { %v451_v55 = vpop.f32.mrf.mxu2 }
  0xf9   : > { %589 = vst [vmem:[%s1347_s10 + $0x18] sm:$0xff] %v572_v54  ;;  %v452_v56 = vadd.f32 %v451_v55, %v411_v53  ;;  %v492_v57 = vpop.f32.mrf.mxu3  ;;  %v610_v11 = vmul.f32 %v572_v54, %v572_v54  ;;  %v596_v29 = vadd.f32 %v595_v10, %v572_v54 }
  0xfb   : > { %v493_v58 = vadd.f32 %v492_v57, %v452_v56  ;;  %v617_v32 = vadd.f32 %v616_v28, %v610_v11 }
  0xfc   : > { %v533_v59 = vpop.f32.mrf.mxu0 }
  0xfd   : > { %v534_v60 = vadd.f32 %v533_v59, %v493_v58 }
  0xfe   : > { %v577_v0 = vpop.f32.mrf.mxu1 }
  0xff   : > { %v575_v62 = vadd.f32 %v574_v52, %v534_v60 }
 0x100   : > { %v454_v63 = vpop.f32.mrf.mxu2 }
 0x101   : > { %590 = vst [vmem:[%s1347_s10 + $0x20] sm:$0xff] %v575_v62  ;;  %v455_v1 = vadd.f32 %v454_v63, %v414_v61  ;;  %v495_v4 = vpop.f32.mrf.mxu3  ;;  %v611_v30 = vmul.f32 %v575_v62, %v575_v62  ;;  %v597_v33 = vadd.f32 %v596_v29, %v575_v62 }
 0x103   : > { %v496_v5 = vadd.f32 %v495_v4, %v455_v1  ;;  %v618_v36 = vadd.f32 %v617_v32, %v611_v30 }
 0x104   : > { %v536_v8 = vpop.f32.mrf.mxu0 }
 0x105   : > { %v537_v9 = vadd.f32 %v536_v8, %v496_v5 }
 0x106   : > { %v580_v17 = vpop.f32.mrf.mxu1 }
 0x107   : > { %v578_v3 = vadd.f32 %v577_v0, %v537_v9 }
 0x108   : > { %v457_v12 = vpop.f32.mrf.mxu2 }
 0x109   : > { %591 = vst [vmem:[%s1347_s10 + $0x28] sm:$0xff] %v578_v3  ;;  %v458_v13 = vadd.f32 %v457_v12, %v417_v2  ;;  %v498_v16 = vpop.f32.mrf.mxu3  ;;  %v612_v14 = vmul.f32 %v578_v3, %v578_v3  ;;  %v598_v37 = vadd.f32 %v597_v33, %v578_v3 }
 0x10b   : > { %v499_v7 = vadd.f32 %v498_v16, %v458_v13  ;;  %v619_v40 = vadd.f32 %v618_v36, %v612_v14 }
 0x10c   : > { %v539_v18 = vpop.f32.mrf.mxu0 }
 0x10d   : > { %v540_v22 = vadd.f32 %v539_v18, %v499_v7 }
 0x10e   : > { %v583_v35 = vpop.f32.mrf.mxu1 }
 0x10f   : > { %v581_v25 = vadd.f32 %v580_v17, %v540_v22 }
 0x110   : > { %v460_v26 = vpop.f32.mrf.mxu2 }
 0x111   : > { %592 = vst [vmem:[%s1347_s10 + $0x30] sm:$0xff] %v581_v25  ;;  %v461_v31 = vadd.f32 %v460_v26, %v420_v23  ;;  %v501_v27 = vpop.f32.mrf.mxu3  ;;  %v613_v38 = vmul.f32 %v581_v25, %v581_v25  ;;  %v599_v41 = vadd.f32 %v598_v37, %v581_v25 }
 0x113   : > { %v502_v15 = vadd.f32 %v501_v27, %v461_v31  ;;  %v620_v43 = vadd.f32 %v619_v40, %v613_v38 }
 0x114   : > { %v542_v34 = vpop.f32.mrf.mxu0 }
 0x115   : > { %v543_v39 = vadd.f32 %v542_v34, %v502_v15 }
 0x117   : > { %v584_v42 = vadd.f32 %v583_v35, %v543_v39 }
 0x119   : > { %593 = vst [vmem:[%s1347_s10 + $0x38] sm:$0xff] %v584_v42  ;;  %v600_v44 = vadd.f32 %v599_v41, %v584_v42  ;;  %v614_v45 = vmul.f32 %v584_v42, %v584_v42 }
 0x11a   : > { %891 = shalt.err (!%p888_p3)
}
 0x11b   : > { %s960_s6 = smov 128   ;;  %s961_s9 = smov 8   ;;  %v601_v46 = vrot.slane %v600_v44, 4  ;;  %v621_v47 = vadd.f32 %v620_v43, %v614_v45  ;;  %vm628_vm1 = vcmask 1040384  }
 0x11c   : > { %818 = dma.vmem_to_hbm [thread:$0]  (%p1020_p5), %s650_s24, 1024, %s652_s25, %s632_s26, %s960_s6, %s960_s6, %s961_s9  }
 0x11d   : > { %v602_v48 = vadd.f32 %v601_v46, %v600_v44  ;;  %v622_v49 = vrot.slane %v621_v47, 4  ;;  %s766_s10 = sshll.u32 %s1344_s8, 1  ;;  %s781_s11 = sshll.u32 %s1003_s16, 1 }
 0x11e   : > { %s664_s20 = scalar_lea.hbm %s1413_s3, %s781_s11  ;;  %s177_s24 = scalar_lea.vmem [#allocation4], %s766_s10 }
 0x11f   : > { %v603_v50 = vrot.slane %v602_v48, 2  ;;  %v623_v51 = vadd.f32 %v622_v49, %v621_v47  ;;  %s666_s25 = sshll.u32 %s177_s24, 4  ;;  %s668_s26 = sshll.u32 %s664_s20, 4  ;;  %s667_s25 = int_to_ptr.vmem [resolvable:$true] %s666_s25  ;;  %s669_s26 = int_to_ptr.hbm [resolvable:$true] %s668_s26 }
 0x120   : > { %s637_s16 = scalar_lea.sflag [#allocation5], %s1344_s8  ;;  %s906_s27 = sshra.s32 %s669_s26, 4  ;;  %s907_s27 = int_to_ptr.hbm [resolvable:$true] %s906_s27 }
 0x121   : > { %v604_v52 = vadd.f32 %v603_v50, %v602_v48  ;;  %v624_v53 = vrot.slane %v623_v51, 2  ;;  %s908_s28 = scalar_lea.hbm %s907_s27, 2  ;;  %s912_s4 = scalar_lea.hbm %s1413_s3, 8 }
 0x122   : > { %p909_p4 = scmp.ne.s32.totalorder %s907_s27, %s908_s28  ;;  %p913_p9 = scmp.lt.s32.totalorder %s907_s27, %s1413_s3 }
 0x123   : > { %v605_v54 = vrot.slane %v604_v52, 1  ;;  %v625_v55 = vadd.f32 %v624_v53, %v623_v51  ;;  %p914_p10 = scmp.lt.s32.totalorder %s912_s4, %s908_s28 }
 0x124   : > { %p910_p7 = pnand %p909_p4, %p1020_p5 }
 0x125   : > { %v626_v56 = vrot.slane %v625_v55, 1  ;;  %v606_v57 = vadd.f32 %v605_v54, %v604_v52  ;;  %p915_p11 = por %p914_p10, %p913_p9 }
 0x126   : > { %p911_p8 = pneg %p910_p7 }
 0x127   : > { %v627_v58 = vadd.f32 %v626_v56, %v625_v55 }
 0x128   : > { %p916_p12 = pnand %p915_p11, %p911_p8 }
 0x129   : > { %v629_v59 = vsel %vm628_vm1, %v606_v57, %v627_v58 }
 0x12a   : > { %630 = vst [vmem:[%s177_s24] sm:$0x3] %v629_v59 }
 0x12b   : > { %919 = shalt.err (!%p916_p12)
}
 0x12c   : > { %819 = dma.vmem_to_hbm [thread:$0]  (%p1020_p5), %s667_s25, 32, %s669_s26, %s637_s16  }
 0x12d PF: > { %p829_p13 = scmp.ge.s32.totalorder %s958_s15, 2  ;;  %s680_s8 = sand.u32 1, %s946_s12  }
 0x12e   : > { %s681_s6 = scalar_lea.sflag [#allocation3], %s680_s8 }
 0x12f   : > { %p823_p0 = pnand %p829_p13, %p1024_p6 }
 0x131   : > { %p824_p1 = pneg %p823_p0 }
 0x133   : > { %937 = dma.done.wait (%p824_p1), %s681_s6, 1024  }
 0x134   : > { %939 = vsyncadd (%p824_p1), %s681_s6, 4294966272  ;;  %s691_s9 = scalar_lea.sflag [#allocation5], %s680_s8 }
 0x135   : > { %941 = dma.done.wait (%p824_p1), %s691_s9, 32  }
 0x136   : > { %943 = vsyncadd (%p824_p1), %s691_s9, 4294967264  ;;  %p17_p5 = scmp.ge.s32.totalorder %s1007_s18, 6   ;;  %s1416_s12 = smov %s950_s13 }
 0x137   : > { %s1417_s13 = smov %s954_s14  ;;  %s1418_s14 = smov %s1018_s21 }
 0x138   : > { %s1419_s15 = smov %s1007_s18  ;;  %19 = sbr.rel (!%p17_p5) target bundleno = 5 (0x5), region = 80 }
 0x13d   :  { %697 = vsyncpa [#allocation3], 1 }
 0x13e   :  { %699 = vsyncpa [#allocation3 + $0x1], 1 }
 0x13f   :  { %700 = vsyncpa [#allocation5], 1 }
 0x140   :  { %702 = vsyncpa [#allocation5 + $0x1], 1 }

</bundles_post_ra>
